<compile_context>
chip_gen: v6e
topology: v6e:2x2x1
jax: 0.10.0
libtpu: 0.0.40
codegen_flags: <defaults>
</compile_context>

<pallas_src>
import math
import functools

import jax
import jax.numpy as jnp
from jax import lax
from jax.experimental import pallas as pl
from jax.experimental.pallas import tpu as pltpu


# Scoped-VMEM budget: working sets below are only a few MiB, but raise the
# limit above the 16/32 MiB scoped defaults while staying well under v7x's
# 64 MiB physical VMEM.
_VMEM_LIMIT = 48 * 1024 * 1024


def _tile(dim, pref, align):
    """Largest tile <= pref that divides `dim` and is a multiple of `align`;
    falls back to the full dim (always a legal BlockSpec size)."""
    if dim <= pref:
        return dim
    t = (pref // align) * align
    while t >= align:
        if dim % t == 0:
            return t
        t -= align
    return dim


# ----------------------------------------------------------------------------
# Tiled linear kernel:  o = x @ W + b   (bf16 MXU operands, f32 accumulation)
# Reused for: QKV projection (grid k-axis = reduction over d_model tiles) and
# the output projection (grid k-axis = reduction over heads).
# ----------------------------------------------------------------------------
def _linear_kernel(x_ref, w_ref, b_ref, o_ref, acc_ref):
    is_first = pl.program_id(2) == 0
    is_last = pl.program_id(2) == pl.num_programs(2) - 1

    @pl.when(is_first)
    def _():
        acc_ref[...] = jnp.zeros_like(acc_ref)

    # Cast the activation block to the pre-cast weight dtype INSIDE the kernel
    # (bf16 MXU operands without a wrapper-side HBM cast pass).
    acc_ref[...] += jnp.dot(x_ref[...].astype(w_ref.dtype), w_ref[...],
                            preferred_element_type=jnp.float32)

    @pl.when(is_last)
    def _():
        o_ref[...] = (acc_ref[...] + b_ref[...]).astype(o_ref.dtype)


def linear_pallas(x2d, w, b, out_dtype=None):
    """x2d: [M, K], w: [K, N], b: [N] (f32) -> [M, N] in out_dtype."""
    M, K = x2d.shape
    K2, N = w.shape
    assert K == K2 and b.shape == (N,)
    out_dtype = out_dtype or x2d.dtype

    sub = 16 if w.dtype == jnp.bfloat16 else 8     # bf16 packs 16 sublanes/vreg
    tm = _tile(M, 512, sub)
    tn = _tile(N, 256, 128)
    tk = _tile(K, 1024, 128)

    return pl.pallas_call(
        _linear_kernel,
        out_shape=jax.ShapeDtypeStruct((M, N), out_dtype),
        grid=(M // tm, N // tn, K // tk),
        in_specs=[
            pl.BlockSpec((tm, tk), lambda i, j, k: (i, k)),
            pl.BlockSpec((tk, tn), lambda i, j, k: (k, j)),
            pl.BlockSpec((1, tn), lambda i, j, k: (0, j)),
        ],
        out_specs=pl.BlockSpec((tm, tn), lambda i, j, k: (i, j)),
        scratch_shapes=[pltpu.VMEM((tm, tn), jnp.float32)],
        compiler_params=pltpu.CompilerParams(
            dimension_semantics=("parallel", "parallel", "arbitrary"),
            vmem_limit_bytes=_VMEM_LIMIT),
    )(x2d, w, b.reshape(1, N).astype(jnp.float32))


def out_proj_pallas(ctx, w3, b, out_dtype=jnp.float32):
    """Output projection contracting over (head, d_k) directly.

    ctx: [B, H, S, d_k]  (per-head attention output, no host-side merge)
    w3 : [H, d_k, N]     (W_out reshaped; rows of W_out are head-major)
    b  : [N]             -> returns [B, S, N]
    """
    B, H, S, Dk = ctx.shape
    H2, Dk2, N = w3.shape
    assert H2 == H and Dk2 == Dk and b.shape == (N,)

    sub = 16 if w3.dtype == jnp.bfloat16 else 8
    tm = _tile(S, 512, sub)          # tm divides S -> an M tile stays in one batch row
    tn = _tile(N, 256, 128)
    spb = S // tm

    return pl.pallas_call(
        _linear_kernel,
        out_shape=jax.ShapeDtypeStruct((B, S, N), out_dtype),
        grid=(B * spb, N // tn, H),                 # head axis = reduction
        in_specs=[
            pl.BlockSpec((None, None, tm, Dk),
                         lambda i, j, h: (i // spb, h, i % spb, 0)),
            pl.BlockSpec((None, Dk, tn), lambda i, j, h: (h, 0, j)),
            pl.BlockSpec((1, tn), lambda i, j, h: (0, j)),
        ],
        out_specs=pl.BlockSpec((None, tm, tn),
                               lambda i, j, h: (i // spb, i % spb, j)),
        scratch_shapes=[pltpu.VMEM((tm, tn), jnp.float32)],
        compiler_params=pltpu.CompilerParams(
            dimension_semantics=("parallel", "parallel", "arbitrary"),
            vmem_limit_bytes=_VMEM_LIMIT),
    )(ctx, w3, b.reshape(1, N).astype(jnp.float32))


# ----------------------------------------------------------------------------
# Flash-style attention over a flattened (pruned) tile schedule.
# ----------------------------------------------------------------------------
def _flash_inner(qi, ki, is_first, is_last, q_ref, k_ref, v_ref, mask_blk,
                 o_ref, m_sc, l_sc, acc_sc, *, causal, tq, tk, offset):
    @pl.when(is_first)
    def _():
        m_sc[...] = jnp.full(m_sc.shape, -jnp.inf, dtype=m_sc.dtype)
        l_sc[...] = jnp.zeros_like(l_sc)
        acc_sc[...] = jnp.zeros_like(acc_sc)

    # QK^T: contract last dims directly (no k transpose); bf16 MXU operands,
    # f32 result.  1/sqrt(d_k) already folded into the Q projection weights.
    s = lax.dot_general(q_ref[...], k_ref[...], (((1,), (1,)), ((), ())),
                        preferred_element_type=jnp.float32)

    if causal:
        # In-kernel mask from iota (no mask DMA).  `offset = Sk - Sq` keeps
        # the diagonal correct when the key sequence is longer than the query.
        row = qi * tq + lax.broadcasted_iota(jnp.int32, s.shape, 0)
        col = ki * tk + lax.broadcasted_iota(jnp.int32, s.shape, 1)
        s = jnp.where(col <= row + offset, s, jnp.float32(-1e9))
    if mask_blk is not None:
        s = jnp.where(mask_blk == 0, jnp.float32(-1e9), s)   # masked_fill(mask==0)

    m_prev = m_sc[...]
    m_new = jnp.maximum(m_prev, jnp.max(s, axis=-1, keepdims=True))
    alpha = jnp.exp(m_prev - m_new)
    p = jnp.exp(s - m_new)
    l_sc[...] = alpha * l_sc[...] + jnp.sum(p, axis=-1, keepdims=True)
    acc_sc[...] = alpha * acc_sc[...] + jnp.dot(
        p.astype(v_ref.dtype), v_ref[...], preferred_element_type=jnp.float32)
    m_sc[...] = m_new

    @pl.when(is_last)
    def _():
        # TODO(synk): use pl.reciprocal(..., approx=True) on TPU-only builds;
        # plain divide kept so the kernel also lowers under interpret mode.
        o_ref[...] = (acc_sc[...] / l_sc[...]).astype(o_ref.dtype)


def _flash_kernel(qi_ref, ki_ref, last_ref, q_ref, k_ref, v_ref, o_ref,
                  m_sc, l_sc, acc_sc, *, causal, tq, tk, offset):
    # NOTE: program_id read ONLY at kernel top level (never inside pl.when).
    t = pl.program_id(2)
    qi = qi_ref[t]
    ki = ki_ref[t]
    _flash_inner(qi, ki, ki == 0, last_ref[t] == 1,
                 q_ref, k_ref, v_ref, None, o_ref, m_sc, l_sc, acc_sc,
                 causal=causal, tq=tq, tk=tk, offset=offset)


def _flash_kernel_masked(qi_ref, ki_ref, last_ref, q_ref, k_ref, v_ref, m_ref,
                         o_ref, m_sc, l_sc, acc_sc):
    t = pl.program_id(2)
    qi = qi_ref[t]
    ki = ki_ref[t]
    _flash_inner(qi, ki, ki == 0, last_ref[t] == 1,
                 q_ref, k_ref, v_ref, m_ref[...], o_ref, m_sc, l_sc, acc_sc,
                 causal=False, tq=0, tk=0, offset=0)


def _tile_schedule(nq, nk, tq, tk, offset, causal):
    """Flattened (qi, ki) tile list; causal=True keeps only tiles that touch
    the lower triangle, so pruned tiles cost neither DMA nor a grid step."""
    qi_l, ki_l, last_l = [], [], []
    for qi in range(nq):
        if causal:
            k_hi = min(nk - 1, max(0, (qi * tq + tq - 1 + offset) // tk))
        else:
            k_hi = nk - 1
        for ki in range(k_hi + 1):
            qi_l.append(qi)
            ki_l.append(ki)
            last_l.append(1 if ki == k_hi else 0)
    return (jnp.asarray(qi_l, jnp.int32), jnp.asarray(ki_l, jnp.int32),
            jnp.asarray(last_l, jnp.int32))


def flash_attention(q=None, k=None, v=None, *, qkv=None, mask=None,
                    causal=False):
    """Online-softmax attention.  Either pass q/k/v as [B, H, S, d_k] arrays,
    or a packed qkv as [3, B, H, S, d_k] (self-attention fast path).
    mask (optional): [B, 1, Sq, Sk] int8.  Returns [B, H, Sq, d_k]."""
    assert not (causal and mask is not None)
    if qkv is not None:
        _, B, H, Sq, Dk = qkv.shape
        Sk = Sq
        dt = qkv.dtype
    else:
        B, H, Sq, Dk = q.shape
        Sk = k.shape[2]
        dt = q.dtype
    offset = Sk - Sq

    tq = _tile(Sq, 512, 128)
    tk = _tile(Sk, 512, 128)
    nq, nk = Sq // tq, Sk // tk
    qi_map, ki_map, last_map = _tile_schedule(nq, nk, tq, tk, offset, causal)
    n_tiles = int(qi_map.shape[0])
    grid = (B, H, n_tiles)

    if qkv is not None:
        q_spec = pl.BlockSpec((None, None, None, tq, Dk),
                              lambda b, h, t, qi, ki, lst: (0, b, h, qi[t], 0))
        k_spec = pl.BlockSpec((None, None, None, tk, Dk),
                              lambda b, h, t, qi, ki, lst: (1, b, h, ki[t], 0))
        v_spec = pl.BlockSpec((None, None, None, tk, Dk),
                              lambda b, h, t, qi, ki, lst: (2, b, h, ki[t], 0))
        operands = (qkv, qkv, qkv)
    else:
        q_spec = pl.BlockSpec((None, None, tq, Dk),
                              lambda b, h, t, qi, ki, lst: (b, h, qi[t], 0))
        k_spec = pl.BlockSpec((None, None, tk, Dk),
                              lambda b, h, t, qi, ki, lst: (b, h, ki[t], 0))
        v_spec = pl.BlockSpec((None, None, tk, Dk),
                              lambda b, h, t, qi, ki, lst: (b, h, ki[t], 0))
        operands = (q, k, v)

    o_spec = pl.BlockSpec((None, None, tq, Dk),
                          lambda b, h, t, qi, ki, lst: (b, h, qi[t], 0))
    out_shape = jax.ShapeDtypeStruct((B, H, Sq, Dk), dt)
    scratch = [pltpu.VMEM((tq, 1), jnp.float32),    # running max
               pltpu.VMEM((tq, 1), jnp.float32),    # running sum
               pltpu.VMEM((tq, Dk), jnp.float32)]   # output accumulator
    # TODO(synk): when d_k < 128 the o_ref store is lane-sparse; a lane-dense
    # multi-head-per-block output needs d_k (or fused heads) % 128 == 0.
    params = pltpu.CompilerParams(
        dimension_semantics=("parallel", "parallel", "arbitrary"),
        vmem_limit_bytes=_VMEM_LIMIT)

    if mask is None:
        kern = functools.partial(_flash_kernel, causal=causal, tq=tq, tk=tk,
                                 offset=offset)
        in_specs = [q_spec, k_spec, v_spec]
    else:
        m_spec = pl.BlockSpec((None, None, tq, tk),
                              lambda b, h, t, qi, ki, lst: (b, 0, qi[t], ki[t]))
        kern = _flash_kernel_masked
        in_specs = [q_spec, k_spec, v_spec, m_spec]
        operands = (*operands, mask)

    return pl.pallas_call(
        kern,
        grid_spec=pltpu.PrefetchScalarGridSpec(
            num_scalar_prefetch=3, grid=grid,
            in_specs=in_specs, out_specs=o_spec, scratch_shapes=scratch),
        out_shape=out_shape,
        compiler_params=params,
    )(qi_map, ki_map, last_map, *operands)


# ----------------------------------------------------------------------------
# MultiHeadedAttention (dropout=0 -> identity, matching the module default)
# ----------------------------------------------------------------------------
class MultiHeadedAttentionPallas:
    def __init__(self, h, d_model, key, use_bf16=True):
        assert d_model % h == 0
        self.d_k = d_model // h
        self.h = h
        self.d_model = d_model
        self.op_dtype = jnp.bfloat16 if use_bf16 else jnp.float32

        bound = 1.0 / math.sqrt(d_model)
        keys = jax.random.split(key, 8)
        self.weights, self.biases = [], []
        for i in range(4):  # q_proj, k_proj, v_proj, out_proj
            w = jax.random.uniform(keys[2 * i], (d_model, d_model),
                                   jnp.float32, -bound, bound)
            b = jax.random.uniform(keys[2 * i + 1], (d_model,),
                                   jnp.float32, -bound, bound)
            self.weights.append(w)
            self.biases.append(b)

        # Pallas operand weights, prepared ONCE (no per-call casts):
        #   * 1/sqrt(d_k) folded into the Q projection weights + bias.
        #   * Q/K/V concatenated for a single fused projection matmul.
        #   * W_out reshaped [H, d_k, d_model] for the head-contraction
        #     output projection (eliminates the host-side head merge).
        scale = 1.0 / math.sqrt(self.d_k)
        wq, bq = self.weights[0] * scale, self.biases[0] * scale
        self.w_qkv_op = jnp.concatenate(
            [wq, self.weights[1], self.weights[2]], axis=1).astype(self.op_dtype)
        self.b_qkv = jnp.concatenate([bq, self.biases[1], self.biases[2]], 0)
        self.w_q_op = wq.astype(self.op_dtype)
        self.b_q = bq
        self.w_k_op = self.weights[1].astype(self.op_dtype)
        self.w_v_op = self.weights[2].astype(self.op_dtype)
        self.w_out_op = self.weights[3].reshape(
            self.h, self.d_k, d_model).astype(self.op_dtype)
        self.b_out = self.biases[3]

        self.attn = None
        # TODO(synk): nn.Dropout path skipped (p=0 default => identity).

    def __call__(self, query, key, value, mask=None, causal=False):
        B, Sq, dm = query.shape
        Sk = key.shape[1]
        H, Dk = self.h, self.d_k
        odt = self.op_dtype
        assert not (causal and mask is not None)

        if mask is not None:
            # mask.unsqueeze(1); int8 cuts the per-tile mask DMA 4x vs int32.
            mask = mask[:, None, :, :].astype(jnp.int8)

        if (query is key) and (key is value):
            # Fused QKV projection (one tiled matmul, one read of x), then a
            # SINGLE relayout to [3, B, H, S, d_k]; the attention kernel picks
            # Q/K/V out of it via its index maps.
            x2d = query.reshape(B * Sq, dm)
            qkv = linear_pallas(x2d, self.w_qkv_op, self.b_qkv, out_dtype=odt)
            qkv5 = qkv.reshape(B, Sq, 3, H, Dk).transpose(2, 0, 3, 1, 4)
            ctx = flash_attention(qkv=qkv5, mask=mask, causal=causal)
        else:
            def proj(x, w, b, S):
                y = linear_pallas(x.reshape(B * S, dm), w, b, out_dtype=odt)
                return y.reshape(B, S, H, Dk).transpose(0, 2, 1, 3)
            q = proj(query, self.w_q_op, self.b_q, Sq)
            k = proj(key, self.w_k_op, self.biases[1], Sk)
            v = proj(value, self.w_v_op, self.biases[2], Sk)
            ctx = flash_attention(q, k, v, mask=mask, causal=causal)

        # TODO(synk): attention probabilities (self.attn) are not materialized
        # (flash-style) to avoid the O(B*H*S^2) HBM writeback.
        self.attn = None

        # Output projection contracts the [B, H, Sq, d_k] attention output over
        # (head, d_k) directly: the transpose(1,2)+view head merge becomes
        # index-map arithmetic (zero HBM cost).
        out = out_proj_pallas(ctx, self.w_out_op, self.b_out,
                              out_dtype=jnp.float32)
        return out


# ----------------------------------------------------------------------------
# Pure-JAX reference (for correctness check only)
# ----------------------------------------------------------------------------
def _reference(mha, query, key, value, mask=None):
    B, Sq, dm = query.shape
    Sk = key.shape[1]
    h, d_k = mha.h, mha.d_k

    def proj(x, i, S):
        y = x.reshape(B * S, dm) @ mha.weights[i] + mha.biases[i]
        return y.reshape(B, S, h, d_k).transpose(0, 2, 1, 3)

    q, k, v = proj(query, 0, Sq), proj(key, 1, Sk), proj(value, 2, Sk)
    s = jnp.einsum("bhqd,bhkd->bhqk", q, k) / math.sqrt(d_k)
    if mask is not None:
        s = jnp.where(mask[:, None, :, :] == 0, -1e9, s)
    p = jax.nn.softmax(s, axis=-1)
    x = jnp.einsum("bhqk,bhkd->bhqd", p, v)
    x = x.transpose(0, 2, 1, 3).reshape(B, Sq, h * d_k)
    out = x.reshape(B * Sq, dm) @ mha.weights[3] + mha.biases[3]
    return out.reshape(B, Sq, dm)


if __name__ == "__main__":
    B, S, d_model, h = 2, 8, 32, 4

    root = jax.random.PRNGKey(0)
    k_param, k_x, k_kv = jax.random.split(root, 3)

    x = jax.random.normal(k_x, (B, S, d_model), jnp.float32)
    kv = jax.random.normal(k_kv, (B, S, d_model), jnp.float32)
    mask = jnp.tril(jnp.ones((S, S), jnp.int32))[None].repeat(B, axis=0)

    # default: bf16 MXU operands, f32 accumulation / f32 softmax
    mha = MultiHeadedAttentionPallas(h, d_model, k_param)
    # f32 operand mode for a tighter check
    mha_f32 = MultiHeadedAttentionPallas(h, d_model, k_param, use_bf16=False)

    ref_self = _reference(mha, x, x, x, mask=mask)
    ref_cross = _reference(mha, x, kv, kv, mask=None)

    # 1) self-attention, causal mask generated in-kernel (pruned grid, no mask DMA)
    out_causal = jax.block_until_ready(mha(x, x, x, causal=True))
    assert out_causal.shape == (B, S, d_model)
    assert jnp.allclose(out_causal, ref_self, atol=5e-2, rtol=5e-2), \
        "causal path mismatch vs reference"

    # 2) same mask passed explicitly as an array (generic masked path, int8 mask)
    out_masked = jax.block_until_ready(mha(x, x, x, mask=mask))
    assert jnp.allclose(out_masked, ref_self, atol=5e-2, rtol=5e-2), \
        "explicit-mask path mismatch vs reference"

    # 3) cross-attention (separate projection path), no mask
    out_cross = jax.block_until_ready(mha(x, kv, kv, mask=None))
    assert jnp.allclose(out_cross, ref_cross, atol=5e-2, rtol=5e-2), \
        "cross-attention path mismatch vs reference"

    # 4) f32 operand mode, tighter tolerance
    out_f32 = jax.block_until_ready(mha_f32(x, x, x, causal=True))
    assert jnp.allclose(out_f32, ref_self, atol=1e-2, rtol=1e-2), \
        "f32 path mismatch vs reference"

    print("KERNEL_OK")
</pallas_src>

<mosaic_0001>
module attributes {stable_mosaic.version = 11 : i64} {
  func.func @_linear_kernel(%arg0: i32, %arg1: i32, %arg2: i32, %arg3: memref<16x32xf32, #tpu.memory_space<vmem>>, %arg4: memref<32x96xbf16, #tpu.memory_space<vmem>>, %arg5: memref<1x96xf32, #tpu.memory_space<vmem>>, %arg6: memref<16x96xbf16, #tpu.memory_space<vmem>>, %arg7: memref<16x96xf32, #tpu.memory_space<vmem>>) attributes {dimension_semantics = [#tpu.dimension_semantics<parallel>, #tpu.dimension_semantics<parallel>, #tpu.dimension_semantics<arbitrary>], iteration_bounds = array<i64: 1, 1, 1>, scalar_prefetch = 0 : i64, scratch_operands = 1 : i64, tpu.core_type = #tpu.core_type<tc>, window_params = [{transform_indices = @transform_0, window_bounds = array<i64: 16, 32>}, {transform_indices = @transform_1, window_bounds = array<i64: 32, 96>}, {transform_indices = @transform_2, window_bounds = array<i64: 1, 96>}, {transform_indices = @transform_3, window_bounds = array<i64: 16, 96>}]} {
    %c0_i32 = arith.constant 0 : i32
    %0 = arith.cmpi eq, %arg2, %c0_i32 : i32
    %c0_i32_0 = arith.constant 0 : i32
    %1 = arith.cmpi eq, %arg2, %c0_i32_0 : i32
    %2 = arith.extui %0 : i1 to i32
    %c0_i32_1 = arith.constant 0 : i32
    %3 = arith.cmpi ne, %2, %c0_i32_1 : i32
    scf.if %3 {
      %cst_10 = arith.constant 0.000000e+00 : f32
      %13 = vector.broadcast %cst_10 : f32 to vector<16x96xf32>
      %c0_11 = arith.constant 0 : index
      %c0_12 = arith.constant 0 : index
      %14 = vector.load %arg7[%c0_11, %c0_12] : memref<16x96xf32, #tpu.memory_space<vmem>>, vector<16x96xf32>
      tpu.vector_store %arg7[%c0_11, %c0_12], %13 {strides = array<i32>} : memref<16x96xf32, #tpu.memory_space<vmem>>, vector<16x96xf32>,
    } else {
    }
    %c0 = arith.constant 0 : index
    %c0_2 = arith.constant 0 : index
    %4 = vector.load %arg7[%c0, %c0_2] : memref<16x96xf32, #tpu.memory_space<vmem>>, vector<16x96xf32>
    %c0_3 = arith.constant 0 : index
    %c0_4 = arith.constant 0 : index
    %5 = vector.load %arg3[%c0_3, %c0_4] : memref<16x32xf32, #tpu.memory_space<vmem>>, vector<16x32xf32>
    %6 = arith.truncf %5 : vector<16x32xf32> to vector<16x32xbf16>
    %c0_5 = arith.constant 0 : index
    %c0_6 = arith.constant 0 : index
    %7 = vector.load %arg4[%c0_5, %c0_6] : memref<32x96xbf16, #tpu.memory_space<vmem>>, vector<32x96xbf16>
    %cst = arith.constant dense<0.000000e+00> : vector<16x96xf32>
    %8 = tpu.matmul %6, %7, %cst {dimension_numbers = #tpu.dot_dimension_numbers<[1], [0], [0], [1], [0, 0, 1, 1], [], []>} : vector<16x32xbf16>, vector<32x96xbf16>, vector<16x96xf32> -> vector<16x96xf32>
    %9 = arith.addf %4, %8 : vector<16x96xf32>
    %c0_7 = arith.constant 0 : index
    %c0_8 = arith.constant 0 : index
    %10 = vector.load %arg7[%c0_7, %c0_8] : memref<16x96xf32, #tpu.memory_space<vmem>>, vector<16x96xf32>
    tpu.vector_store %arg7[%c0_7, %c0_8], %9 {strides = array<i32>} : memref<16x96xf32, #tpu.memory_space<vmem>>, vector<16x96xf32>,
    %11 = arith.extui %1 : i1 to i32
    %c0_i32_9 = arith.constant 0 : i32
    %12 = arith.cmpi ne, %11, %c0_i32_9 : i32
    scf.if %12 {
      %c0_10 = arith.constant 0 : index
      %c0_11 = arith.constant 0 : index
      %13 = vector.load %arg7[%c0_10, %c0_11] : memref<16x96xf32, #tpu.memory_space<vmem>>, vector<16x96xf32>
      %c0_12 = arith.constant 0 : index
      %c0_13 = arith.constant 0 : index
      %14 = vector.load %arg5[%c0_12, %c0_13] : memref<1x96xf32, #tpu.memory_space<vmem>>, vector<1x96xf32>
      %15 = vector.broadcast %14 : vector<1x96xf32> to vector<16x96xf32>
      %16 = arith.addf %13, %15 : vector<16x96xf32>
      %17 = arith.truncf %16 : vector<16x96xf32> to vector<16x96xbf16>
      %c0_14 = arith.constant 0 : index
      %c0_15 = arith.constant 0 : index
      %18 = vector.load %arg6[%c0_14, %c0_15] : memref<16x96xbf16, #tpu.memory_space<vmem>>, vector<16x96xbf16>
      tpu.vector_store %arg6[%c0_14, %c0_15], %17 {strides = array<i32>} : memref<16x96xbf16, #tpu.memory_space<vmem>>, vector<16x96xbf16>,
    } else {
    }
    return
  }
  func.func @transform_0(%arg0: i32, %arg1: i32, %arg2: i32) -> (i32, i32) {
    %c0_i32 = arith.constant 0 : i32
    return %arg0, %arg2 : i32, i32
  }
  func.func @transform_1(%arg0: i32, %arg1: i32, %arg2: i32) -> (i32, i32) {
    %c0_i32 = arith.constant 0 : i32
    return %arg2, %arg1 : i32, i32
  }
  func.func @transform_2(%arg0: i32, %arg1: i32, %arg2: i32) -> (i32, i32) {
    %c0_i32 = arith.constant 0 : i32
    %c0_i32_0 = arith.constant 0 : i32
    return %c0_i32, %arg1 : i32, i32
  }
  func.func @transform_3(%arg0: i32, %arg1: i32, %arg2: i32) -> (i32, i32) {
    %c0_i32 = arith.constant 0 : i32
    return %arg0, %arg1 : i32, i32
  }
}

</mosaic_0001>

<bundles_post_ra>
// kernel: tpu_custom_call.1
= control target key start
LH: loop header
LB: loop body
LE: loop exit
PB: predicated region body
PF: predicated region fallthrough
CT: control target
= control target key end

     0   :  { %8 = vsyncpa [#allocation4], 0  ;;  %s312_s0 = inlined_call_operand.hbm [shape: f32[16,32], index: 0, kind: input, shape index: {}]   ;;  %s313_s1 = inlined_call_operand.hbm [shape: bf16[32,96], index: 1, kind: input, shape index: {}]   ;;  %s314_s2 = inlined_call_operand.vmem [shape: f32[1,96], index: 2, kind: input, shape index: {}]   ;;  %s315_s3 = inlined_call_operand.hbm [shape: bf16[16,96], index: 3, kind: output, shape index: {}]  }
   0x1   :  { %9 = vsyncpa [#allocation7], 0 }
   0x2   :  { %10 = vsyncpa [#allocation5], 0  ;;  %s261_s12 = smov [#allocation3]  }
   0x3   :  { %s16_s13 = sshll.u32 %s261_s12, 4  ;;  %s17_s13 = int_to_ptr.vmem [resolvable:$true] %s16_s13 }
   0x4   :  { %s203_s14 = scalar_lea.vmem %s17_s13, 256  ;;  %p208_p1 = scmp.lt.s32.totalorder %s17_s13, %s17_s13 }
   0x5   :  { %p204_p0 = scmp.ne.s32.totalorder %s17_s13, %s203_s14  ;;  %p209_p2 = scmp.lt.s32.totalorder %s203_s14, %s203_s14 }
   0x7   :  { %p210_p3 = por %p209_p2, %p208_p1 }
   0x9   :  { %p211_p4 = pnand %p210_p3, %p204_p0 }
   0xb   :  { %214 = shalt.err (!%p211_p4)
}
   0xc   :  { %s262_s15 = smov 128   ;;  %s263_s16 = smov 8  }
   0xd   :  { %22 = dma.hbm_to_vmem [thread:$0]  %s312_s0, 256, %s17_s13, [#allocation4], %s262_s15, %s262_s15, %s263_s16  }
   0xe   :  { %s264_s19 = smov [#allocation6]  }
   0xf   :  { %s28_s20 = sshll.u32 %s264_s19, 4  ;;  %s29_s20 = int_to_ptr.vmem [resolvable:$true] %s28_s20 }
  0x10   :  { %s223_s21 = scalar_lea.vmem %s29_s20, 256  ;;  %p228_p6 = scmp.lt.s32.totalorder %s29_s20, %s29_s20 }
  0x11   :  { %p224_p5 = scmp.ne.s32.totalorder %s29_s20, %s223_s21  ;;  %p229_p7 = scmp.lt.s32.totalorder %s223_s21, %s223_s21 }
  0x13   :  { %p230_p8 = por %p229_p7, %p228_p6 }
  0x15   :  { %p231_p9 = pnand %p230_p8, %p224_p5 }
  0x17   :  { %234 = shalt.err (!%p231_p9)
}
  0x18   :  { %s265_s22 = smov 64   ;;  %s266_s23 = smov 4  }
  0x19   :  { %34 = dma.hbm_to_vmem [thread:$0]  %s313_s1, 256, %s29_s20, [#allocation7], %s265_s22, %s265_s22, %s266_s23  }
  0x1a   :  { %255 = dma.done.wait [#allocation4], 256  }
  0x1b   :  { %256 = vsyncadd [#allocation4], 4294967040 }
  0x1c   :  { %257 = dma.done.wait [#allocation7], 256  }
  0x1d   :  { %258 = vsyncadd [#allocation7], 4294967040  ;;  %vm48_vm0 = vcmask 785408   ;;  %v267_v0 = vmov 0.0   ;;  %vm268_vm1 = vmmov 0   ;;  %v193_v1 = vld [vmem:[#allocation6 + $0x8] sm:$0xff]  }
  0x1e   :  { %49 = vst.msk [vmem:[#allocation2] sm:$0xff] %vm48_vm0, %v267_v0  ;;  %50 = vst.msk [vmem:[#allocation2 + $0x8] sm:$0xff] %vm48_vm0, %v267_v0  ;;  %176 = vmatprep.subr.bf16.mxu0 %v267_v0  ;;  %180 = vmatprep.mubr.msk.bf16.mxu0 %vm268_vm1, %v267_v0  ;;  %v194_v2 = vld [vmem:[#allocation6] sm:$0xff]   ;;  %v53_v3 = vld [vmem:[#allocation3] sm:$0xff]  ;;  %vm72_vm2 = vcmask 261120   ;;  %vm144_vm3 = vcmask 781312  }
  0x1f   :  { %177 = vmatpush3.bf16.msra.mxu0 %v193_v1  ;;  %v54_v4 = vld [vmem:[#allocation3 + $0x8] sm:$0xff]  ;;  %v168_v14 = vld [vmem:[%s314_s2] ss:$0 sm:$0xff]  ;;  %s269_s26 = smov [#allocation8]  }
  0x20   :  { %178 = vmatprep.subr.bf16.mxu0 %v267_v0  ;;  %v55_v5 = vpack.c.bf16 %v54_v4, %v53_v3  ;;  %s152_s27 = sshll.u32 %s269_s26, 4  ;;  %s153_s27 = int_to_ptr.vmem [resolvable:$true] %s152_s27 }
  0x21   :  { %s235_s28 = scalar_lea.vmem %s153_s27, 128  ;;  %p240_p11 = scmp.lt.s32.totalorder %s153_s27, %s153_s27 }
  0x22   :  { %p236_p10 = scmp.ne.s32.totalorder %s153_s27, %s235_s28  ;;  %p241_p12 = scmp.lt.s32.totalorder %s235_s28, %s235_s28 }
  0x23   :  { %179 = vmatpush3.bf16.msra.mxu0 %v194_v2 }
  0x24   :  { %p242_p13 = por %p241_p12, %p240_p11 }
  0x25   :  { %v51_v6 = vld [vmem:[#allocation2] sm:$0xff]  ;;  %v52_v10 = vld [vmem:[#allocation2 + $0x8] sm:$0xff] }
  0x26   :  { %181 = vmatmul.mubr.msk.bf16.vlgmr.msra.gmra.mxu0 %vm72_vm2, %v55_v5  ;;  %p243_p0 = pnand %p242_p13, %p236_p10 }
  0xe6   :  { %v110_v7 = vpop.f32.mrf.mxu0 }
  0xe7   :  { %v117_v8 = vadd.f32 %v110_v7, %v51_v6 }
  0xe8   :  { %v182_v9 = vpop.f32.mrf.mxu0 }
  0xe9   :  { %120 = vst.msk [vmem:[#allocation2] sm:$0xff] %vm48_vm0, %v117_v8 }
  0xea   :  { %v113_v11 = vpop.f32.mrf.mxu0 }
  0xeb   :  { %v118_v12 = vadd.f32 %v113_v11, %v52_v10 }
  0xec   :  { %v183_v13 = vpop.f32.mrf.mxu0 }
  0xed   :  { %121 = vst.msk [vmem:[#allocation2 + $0x8] sm:$0xff] %vm48_vm0, %v118_v12 }
  0xf0   :  { %v125_v15 = vld [vmem:[#allocation2] sm:$0xff] }
  0xf1   :  { %v134_v16 = vadd.f32 %v168_v14, %v125_v15 }
  0xf3   :  { %v171_v17 = vpack.c.bf16 %v134_v16, %v134_v16 }
  0xf4   :  { %v126_v18 = vld [vmem:[#allocation2 + $0x8] sm:$0xff] }
  0xf5   :  { %v135_v19 = vadd.f32 %v168_v14, %v126_v18  ;;  %145 = vst.msk [vmem:[#allocation8] sm:$0xf] %vm144_vm3, %v171_v17 }
  0xf7   :  { %v172_v20 = vpack.c.bf16 %v135_v19, %v135_v19 }
  0xf9   :  { %146 = vst.msk [vmem:[#allocation8 + $0x4] sm:$0xf] %vm144_vm3, %v172_v20 }
  0xfa   :  { %246 = shalt.err (!%p243_p0)
}
  0xfb   :  { %158 = dma.vmem_to_hbm [thread:$0]  %s153_s27, 128, %s315_s3, [#allocation5], %s265_s22, %s265_s22, %s266_s23  }
  0xfc   :  { %259 = dma.done.wait [#allocation5], 128  }
  0xfd   :  { %260 = vsyncadd [#allocation5], 4294967168 }
  0xfe   :  { %162 = vsyncpa [#allocation4], 1 }
  0xff   :  { %163 = vsyncpa [#allocation7], 1 }
 0x100   :  { %164 = vsyncpa [#allocation5], 1 }

</bundles_post_ra>
